<compile_context>
chip_gen: v6e
topology: v6e:2x2x1
jax: 0.10.0
libtpu: 0.0.40
codegen_flags: <defaults>
</compile_context>

<pallas_src>
import functools
from typing import NamedTuple

import jax
import jax.numpy as jnp
from jax.experimental import pallas as pl
from jax.experimental.pallas import tpu as pltpu


def _round_up(x, m):
    return ((x + m - 1) // m) * m


def _largest_tile(dim_p, unit, cap):
    """Largest multiple of `unit` that divides `dim_p` and is <= cap.
    `dim_p` must itself be a multiple of `unit`."""
    q = dim_p // unit
    best = 1
    for d in range(1, q + 1):
        if q % d == 0 and d * unit <= cap:
            best = d
    return best * unit


@functools.lru_cache(maxsize=1)
def _chip_caps():
    kind = ""
    try:
        kind = jax.devices()[0].device_kind.lower()
    except Exception:  # pragma: no cover
        pass
    if "v5" in kind or "v6" in kind:
        # 128 MiB physical VMEM, 1 TC: large tiles cut weight re-reads and
        # per-grid-step overhead on these mem-bound chips; raise scoped VMEM.
        return dict(tm=1024, tn=512, tk=2048,
                    vmem_limit=96 * 1024 * 1024, two_tc=False)
    # v7x (64 MiB VMEM, 2 TCs) and unknown chips: conservative, v7x-safe caps
    # (<= ~10 MiB double-buffered VMEM at the caps, under the 32 MiB scoped).
    return dict(tm=512, tn=256, tk=1024, vmem_limit=None, two_tc="v7" in kind)


def _pad_plan(IN, OUT, caps):
    """Batch-independent padding of the feature dims (shared by init & call)."""
    OUTp = _round_up(OUT, 128)            # lane-dense output / weight tiles
    INp_min = _round_up(IN, 8)
    if INp_min <= caps["tk"]:
        return INp_min, OUTp, False, INp_min          # K untiled (common case)
    INp = _round_up(IN, 128)                          # K tiled: tk needs 128
    return INp, OUTp, True, _largest_tile(INp, 128, caps["tk"])


class LinearParams(NamedTuple):
    weight_t: jax.Array   # [INp, OUTp] pre-transposed / padded / cast at init
    bias: jax.Array       # [1, OUTp]   padded at init, native dtype
    in_features: int
    out_features: int


def prepare_params(weight, bias, compute_dtype=None):
    """One-time (init) parameter layout transform, hoisted out of the per-call
    path: transpose to [IN, OUT], pad to the kernel's padded feature dims, and
    optionally cast to a narrower compute dtype (e.g. bf16 on v6e/v7x)."""
    OUT, IN = weight.shape
    caps = _chip_caps()
    INp, OUTp, _, _ = _pad_plan(IN, OUT, caps)
    w_dtype = compute_dtype if compute_dtype is not None else weight.dtype
    w_t = jnp.asarray(weight).T.astype(w_dtype)
    if (INp, OUTp) != (IN, OUT):
        w_t = jnp.pad(w_t, ((0, INp - IN), (0, OUTp - OUT)))
    b = jnp.asarray(bias)
    if OUTp != OUT:
        b = jnp.pad(b, (0, OUTp - OUT))
    return LinearParams(w_t, b.reshape(1, OUTp), IN, OUT)


def _linear_sub_kernel(x_ref, w_ref, b_ref, m_ref, o_ref):
    """K-untiled case: single MXU dot + fused bias-add / m-subtract epilogue."""
    acc = jnp.dot(x_ref[...], w_ref[...], preferred_element_type=jnp.float32)
    o_ref[...] = (
        acc + b_ref[...].astype(jnp.float32) - m_ref[...].astype(jnp.float32)
    ).astype(o_ref.dtype)


def _linear_sub_kernel_ktiled(x_ref, w_ref, b_ref, m_ref, o_ref, acc_ref):
    """K-tiled case: f32 VMEM accumulator, overwrite on k==0 (no zero-init
    pass), fused epilogue + single downcast on the last k step."""
    k = pl.program_id(2)
    partial = jnp.dot(x_ref[...], w_ref[...], preferred_element_type=jnp.float32)

    @pl.when(k == 0)
    def _first():
        acc_ref[...] = partial

    @pl.when(k > 0)
    def _accumulate():
        acc_ref[...] += partial

    @pl.when(k == pl.num_programs(2) - 1)
    def _finalize():
        o_ref[...] = (
            acc_ref[...]
            + b_ref[...].astype(jnp.float32)
            - m_ref[...].astype(jnp.float32)
        ).astype(o_ref.dtype)


def model_hpu_forward(inp, m, params: LinearParams):
    """ModelHpu.forward: Linear1(inp) - m  ==  inp @ W^T + b - m."""
    B, IN = inp.shape
    assert IN == params.in_features
    OUT = params.out_features
    caps = _chip_caps()
    INp, OUTp, k_tiled, tk = _pad_plan(IN, OUT, caps)
    assert params.weight_t.shape == (INp, OUTp), "params prepared for other shape"

    out_dtype = inp.dtype
    x = inp if inp.dtype == params.weight_t.dtype else inp.astype(params.weight_t.dtype)

    # Sublane packing multiple: bf16 packs 16 rows per vreg sublane group.
    sub = 16 if jnp.dtype(x.dtype).itemsize < 4 else 8
    Bp = _round_up(B, sub)
    tm = _largest_tile(Bp, sub, caps["tm"])
    tn = _largest_tile(OUTp, 128, caps["tn"])

    # v7x: make sure both TensorCores get work along a "parallel" grid axis.
    if caps["two_tc"] and Bp // tm == 1 and OUTp // tn == 1:
        if tn >= 256 and (tn // 128) % 2 == 0:
            tn //= 2
        elif tm >= 2 * sub and (tm // sub) % 2 == 0:
            tm //= 2

    # Guarded pads (no-ops when already aligned); m/bias stay native dtype.
    if (Bp, INp) != (B, IN):
        x = jnp.pad(x, ((0, Bp - B), (0, INp - IN)))
    m_p = m if m.shape == (Bp, OUTp) else jnp.pad(m, ((0, Bp - B), (0, OUTp - OUT)))
    # TODO(synk): could alias m's buffer via input_output_aliases when shapes &
    # dtypes already match and the caller does not reuse m (skipped: unsafe).

    cost = pl.CostEstimate(
        flops=2 * Bp * INp * OUTp,
        transcendentals=0,
        bytes_accessed=(Bp * INp * jnp.dtype(x.dtype).itemsize
                        + INp * OUTp * jnp.dtype(params.weight_t.dtype).itemsize
                        + Bp * OUTp * jnp.dtype(m_p.dtype).itemsize
                        + OUTp * jnp.dtype(params.bias.dtype).itemsize
                        + Bp * OUTp * jnp.dtype(out_dtype).itemsize),
    )

    if not k_tiled:
        kernel = _linear_sub_kernel
        semantics = ("parallel", "parallel")
        grid_spec = pltpu.PrefetchScalarGridSpec(
            num_scalar_prefetch=0,
            grid=(Bp // tm, OUTp // tn),
            in_specs=[
                pl.BlockSpec((tm, INp), lambda i, j: (i, 0)),   # x
                pl.BlockSpec((INp, tn), lambda i, j: (0, j)),   # W^T (pre-padded)
                pl.BlockSpec((1, tn), lambda i, j: (0, j)),     # bias
                pl.BlockSpec((tm, tn), lambda i, j: (i, j)),    # m
            ],
            out_specs=pl.BlockSpec((tm, tn), lambda i, j: (i, j)),
        )
    else:
        kernel = _linear_sub_kernel_ktiled
        semantics = ("parallel", "parallel", "arbitrary")
        grid_spec = pltpu.PrefetchScalarGridSpec(
            num_scalar_prefetch=0,
            grid=(Bp // tm, OUTp // tn, INp // tk),
            in_specs=[
                pl.BlockSpec((tm, tk), lambda i, j, k: (i, k)),  # x
                pl.BlockSpec((tk, tn), lambda i, j, k: (k, j)),  # W^T
                pl.BlockSpec((1, tn), lambda i, j, k: (0, j)),   # bias
                pl.BlockSpec((tm, tn), lambda i, j, k: (i, j)),  # m
            ],
            out_specs=pl.BlockSpec((tm, tn), lambda i, j, k: (i, j)),
            scratch_shapes=[pltpu.VMEM((tm, tn), jnp.float32)],
        )

    out_p = pl.pallas_call(
        kernel,
        out_shape=jax.ShapeDtypeStruct((Bp, OUTp), out_dtype),
        grid_spec=grid_spec,
        compiler_params=pltpu.CompilerParams(
            dimension_semantics=semantics,
            vmem_limit_bytes=caps["vmem_limit"],
        ),
        cost_estimate=cost,
    )(x, params.weight_t, params.bias, m_p)

    # Guarded slice back to the logical shape.
    if (Bp, OUTp) != (B, OUT):
        out_p = out_p[:B, :OUT]
    return out_p


if __name__ == "__main__":
    key = jax.random.PRNGKey(0)
    B, IN, OUT = 8, 32, 16  # small shapes consistent with Linear(inp_size, out_size)

    k1, k2, k3, k4 = jax.random.split(key, 4)
    # Deterministic parameter init (mimics nn.Linear uniform(-1/sqrt(IN), 1/sqrt(IN)))
    bound = 1.0 / jnp.sqrt(jnp.float32(IN))
    weight = jax.random.uniform(k1, (OUT, IN), jnp.float32, -bound, bound)
    bias = jax.random.uniform(k2, (OUT,), jnp.float32, -bound, bound)

    inp = jax.random.normal(k3, (B, IN), jnp.float32)
    m = jax.random.normal(k4, (B, OUT), jnp.float32)

    # One-time parameter layout transform (init time), NOT in the per-call path.
    params = prepare_params(weight, bias)

    out = model_hpu_forward(inp, m, params)
    out = jax.block_until_ready(out)

    # Reference check in plain JAX
    ref = inp @ weight.T + bias - m
    assert out.shape == (B, OUT)
    assert jnp.allclose(out, ref, atol=1e-5, rtol=1e-5), "mismatch vs reference"

    print("KERNEL_OK")
</pallas_src>

<mosaic_0001>
module attributes {stable_mosaic.version = 11 : i64} {
  func.func @_linear_sub_kernel(%arg0: i32, %arg1: i32, %arg2: memref<8x32xf32, #tpu.memory_space<vmem>>, %arg3: memref<32x128xf32, #tpu.memory_space<vmem>>, %arg4: memref<1x128xf32, #tpu.memory_space<vmem>>, %arg5: memref<8x128xf32, #tpu.memory_space<vmem>>, %arg6: memref<8x128xf32, #tpu.memory_space<vmem>>) attributes {dimension_semantics = [#tpu.dimension_semantics<parallel>, #tpu.dimension_semantics<parallel>], iteration_bounds = array<i64: 1, 1>, scalar_prefetch = 0 : i64, scratch_operands = 0 : i64, tpu.core_type = #tpu.core_type<tc>, window_params = [{transform_indices = @transform_0, window_bounds = array<i64: 8, 32>}, {transform_indices = @transform_1, window_bounds = array<i64: 32, 128>}, {transform_indices = @transform_2, window_bounds = array<i64: 1, 128>}, {transform_indices = @transform_3, window_bounds = array<i64: 8, 128>}, {transform_indices = @transform_4, window_bounds = array<i64: 8, 128>}]} {
    %c0 = arith.constant 0 : index
    %c0_0 = arith.constant 0 : index
    %0 = vector.load %arg2[%c0, %c0_0] : memref<8x32xf32, #tpu.memory_space<vmem>>, vector<8x32xf32>
    %c0_1 = arith.constant 0 : index
    %c0_2 = arith.constant 0 : index
    %1 = vector.load %arg3[%c0_1, %c0_2] : memref<32x128xf32, #tpu.memory_space<vmem>>, vector<32x128xf32>
    %cst = arith.constant dense<0.000000e+00> : vector<8x128xf32>
    %2 = tpu.matmul %0, %1, %cst {dimension_numbers = #tpu.dot_dimension_numbers<[1], [0], [0], [1], [0, 0, 1, 1], [], []>} : vector<8x32xf32>, vector<32x128xf32>, vector<8x128xf32> -> vector<8x128xf32>
    %c0_3 = arith.constant 0 : index
    %c0_4 = arith.constant 0 : index
    %3 = vector.load %arg4[%c0_3, %c0_4] : memref<1x128xf32, #tpu.memory_space<vmem>>, vector<1x128xf32>
    %4 = vector.broadcast %3 : vector<1x128xf32> to vector<8x128xf32>
    %5 = arith.addf %2, %4 : vector<8x128xf32>
    %c0_5 = arith.constant 0 : index
    %c0_6 = arith.constant 0 : index
    %6 = vector.load %arg5[%c0_5, %c0_6] : memref<8x128xf32, #tpu.memory_space<vmem>>, vector<8x128xf32>
    %7 = arith.subf %5, %6 : vector<8x128xf32>
    %c0_7 = arith.constant 0 : index
    %c0_8 = arith.constant 0 : index
    %8 = vector.load %arg6[%c0_7, %c0_8] : memref<8x128xf32, #tpu.memory_space<vmem>>, vector<8x128xf32>
    tpu.vector_store %arg6[%c0_7, %c0_8], %7 {strides = array<i32>} : memref<8x128xf32, #tpu.memory_space<vmem>>, vector<8x128xf32>,
    return
  }
  func.func @transform_0(%arg0: i32, %arg1: i32) -> (i32, i32) {
    %c0_i32 = arith.constant 0 : i32
    %c0_i32_0 = arith.constant 0 : i32
    return %arg0, %c0_i32 : i32, i32
  }
  func.func @transform_1(%arg0: i32, %arg1: i32) -> (i32, i32) {
    %c0_i32 = arith.constant 0 : i32
    %c0_i32_0 = arith.constant 0 : i32
    return %c0_i32, %arg1 : i32, i32
  }
  func.func @transform_2(%arg0: i32, %arg1: i32) -> (i32, i32) {
    %c0_i32 = arith.constant 0 : i32
    %c0_i32_0 = arith.constant 0 : i32
    return %c0_i32, %arg1 : i32, i32
  }
  func.func @transform_3(%arg0: i32, %arg1: i32) -> (i32, i32) {
    %c0_i32 = arith.constant 0 : i32
    return %arg0, %arg1 : i32, i32
  }
  func.func @transform_4(%arg0: i32, %arg1: i32) -> (i32, i32) {
    %c0_i32 = arith.constant 0 : i32
    return %arg0, %arg1 : i32, i32
  }
}

</mosaic_0001>

<bundles_post_ra>
// kernel: tpu_custom_call.1
= control target key start
LH: loop header
LB: loop body
LE: loop exit
PB: predicated region body
PF: predicated region fallthrough
CT: control target
= control target key end

     0   :  { %9 = vsyncpa [#allocation3], 0  ;;  %s320_s0 = inlined_call_operand.hbm [shape: f32[8,32], index: 0, kind: input, shape index: {}]   ;;  %s321_s1 = inlined_call_operand.hbm [shape: f32[32,128], index: 1, kind: input, shape index: {}]   ;;  %s322_s2 = inlined_call_operand.vmem [shape: f32[1,128], index: 2, kind: input, shape index: {}]   ;;  %s323_s3 = inlined_call_operand.hbm [shape: f32[8,128], index: 3, kind: input, shape index: {}]   ;;  %s324_s4 = inlined_call_operand.hbm [shape: f32[8,128], index: 4, kind: output, shape index: {}]  }
   0x1   :  { %10 = vsyncpa [#allocation6], 0 }
   0x2   :  { %11 = vsyncpa [#allocation4], 0  ;;  %s272_s15 = smov [#allocation5]  }
   0x3   :  { %s27_s16 = sshll.u32 %s272_s15, 4  ;;  %s28_s16 = int_to_ptr.vmem [resolvable:$true] %s27_s16 }
   0x4   :  { %s194_s17 = scalar_lea.vmem %s28_s16, 512  ;;  %p199_p1 = scmp.lt.s32.totalorder %s28_s16, %s28_s16 }
   0x5   :  { %p195_p0 = scmp.ne.s32.totalorder %s28_s16, %s194_s17  ;;  %p200_p2 = scmp.lt.s32.totalorder %s194_s17, %s194_s17 }
   0x7   :  { %p201_p3 = por %p200_p2, %p199_p1 }
   0x9   :  { %p202_p4 = pnand %p201_p3, %p195_p0 }
   0xb   :  { %205 = shalt.err (!%p202_p4)
}
   0xc   :  { %s273_s18 = smov 128   ;;  %s274_s19 = smov 8  }
   0xd   :  { %33 = dma.hbm_to_vmem [thread:$0]  %s321_s1, 512, %s28_s16, [#allocation6], %s273_s18, %s273_s18, %s274_s19  }
   0xe   :  { %s275_s22 = smov [#allocation2]   ;;  %s276_s24 = smov [#allocation7]  }
   0xf   :  { %s18_s23 = sshll.u32 %s275_s22, 4  ;;  %s42_s25 = sshll.u32 %s276_s24, 4  ;;  %s19_s23 = int_to_ptr.vmem [resolvable:$true] %s18_s23  ;;  %s43_s25 = int_to_ptr.vmem [resolvable:$true] %s42_s25 }
  0x10   :  { %s214_s26 = scalar_lea.vmem %s19_s23, 128  ;;  %p219_p6 = scmp.lt.s32.totalorder %s19_s23, %s19_s23 }
  0x11   :  { %p215_p5 = scmp.ne.s32.totalorder %s19_s23, %s214_s26  ;;  %p220_p7 = scmp.lt.s32.totalorder %s214_s26, %s214_s26 }
  0x13   :  { %p221_p8 = por %p220_p7, %p219_p6 }
  0x15   :  { %p222_p9 = pnand %p221_p8, %p215_p5 }
  0x17   :  { %225 = shalt.err (!%p222_p9)
}
  0x18   :  { %21 = dma.hbm_to_vmem [thread:$0]  %s320_s0, 128, %s19_s23, [#allocation3]  }
  0x19   :  { %s234_s29 = scalar_lea.vmem %s43_s25, 128  ;;  %p239_p11 = scmp.lt.s32.totalorder %s43_s25, %s43_s25 }
  0x1a   :  { %p235_p10 = scmp.ne.s32.totalorder %s43_s25, %s234_s29  ;;  %p240_p12 = scmp.lt.s32.totalorder %s234_s29, %s234_s29 }
  0x1c   :  { %p241_p13 = por %p240_p12, %p239_p11 }
  0x1e   :  { %p242_p0 = pnand %p241_p13, %p235_p10 }
  0x20   :  { %245 = shalt.err (!%p242_p0)
}
  0x21   :  { %45 = dma.hbm_to_vmem [thread:$0]  %s323_s3, 128, %s43_s25, [#allocation6]  }
  0x22   :  { %266 = dma.done.wait [#allocation3], 128  }
  0x23   :  { %267 = vsyncadd [#allocation3], 4294967168 }
  0x24   :  { %268 = dma.done.wait [#allocation6], 640  }
  0x25   :  { %269 = vsyncadd [#allocation6], 4294966656  ;;  %v277_v0 = vmov 0.0   ;;  %vm278_vm0 = vmmov 0   ;;  %v59_v1 = vld [vmem:[#allocation5 + $0x18] sm:$0xff]  ;;  %v58_v2 = vld [vmem:[#allocation5 + $0x10] sm:$0xff] }
  0x26   :  { %167 = vmatprep.subr.mxu0 %v277_v0  ;;  %175 = vmatprep.mubr.msk.f32.mxu0 %vm278_vm0, %v277_v0  ;;  %v57_v3 = vld [vmem:[#allocation5 + $0x8] sm:$0xff]  ;;  %v56_v4 = vld [vmem:[#allocation5] sm:$0xff]  ;;  %v55_v5 = vld [vmem:[#allocation2] sm:$0xff]  ;;  %vm67_vm1 = vcmask 261120   ;;  %s279_s5 = smov [#allocation8]  }
  0x27   :  { %168 = vmatpush3.msra.mxu0 %v59_v1  ;;  %v160_v6 = vld [vmem:[%s322_s2] ss:$0 sm:$0xff]  ;;  %v141_v8 = vld [vmem:[#allocation7] sm:$0xff]  ;;  %s150_s6 = sshll.u32 %s279_s5, 4  ;;  %s151_s6 = int_to_ptr.vmem [resolvable:$true] %s150_s6 }
  0x28   :  { %169 = vmatprep.subr.mxu0 %v277_v0  ;;  %s246_s7 = scalar_lea.vmem %s151_s6, 128  ;;  %p251_p2 = scmp.lt.s32.totalorder %s151_s6, %s151_s6 }
  0x29   :  { %170 = vmatpush3.msra.mxu0 %v58_v2  ;;  %p247_p1 = scmp.ne.s32.totalorder %s151_s6, %s246_s7  ;;  %p252_p3 = scmp.lt.s32.totalorder %s246_s7, %s246_s7 }
  0x2a   :  { %171 = vmatprep.subr.mxu0 %v277_v0 }
  0x2b   :  { %172 = vmatpush3.msra.mxu0 %v57_v3  ;;  %p253_p4 = por %p252_p3, %p251_p2 }
  0x2c   :  { %173 = vmatprep.subr.mxu0 %v277_v0 }
  0x2d   :  { %174 = vmatpush3.msra.mxu0 %v56_v4  ;;  %p254_p5 = pnand %p253_p4, %p247_p1 }
  0x2e   :  { %176 = vmatmul.mubr.msk.f32.vlgmr.msra.gmra.mxu0 %vm67_vm1, %v55_v5 }
  0xee   :  { %v137_v7 = vpop.f32.mrf.mxu0 }
  0xef   :  { %v138_v9 = vadd.f32 %v160_v6, %v137_v7 }
  0xf0   :  { %v177_v10 = vpop.f32.mrf.mxu0 }
  0xf1   :  { %v142_v11 = vsub.f32 %v138_v9, %v141_v8 }
  0xf3   :  { %143 = vst [vmem:[#allocation8] sm:$0xff] %v142_v11 }
  0xf4   :  { %257 = shalt.err (!%p254_p5)
}
  0xf5   :  { %153 = dma.vmem_to_hbm [thread:$0]  %s151_s6, 128, %s324_s4, [#allocation4]  }
  0xf6   :  { %270 = dma.done.wait [#allocation4], 128  }
  0xf7   :  { %271 = vsyncadd [#allocation4], 4294967168 }
  0xf8   :  { %157 = vsyncpa [#allocation3], 1 }
  0xf9   :  { %158 = vsyncpa [#allocation6], 1 }
  0xfa   :  { %159 = vsyncpa [#allocation4], 1 }

</bundles_post_ra>
